<compile_context>
chip_gen: v7x
topology: tpu7x:2x2x1
jax: 0.10.0
libtpu: 0.0.40
codegen_flags: <defaults>
</compile_context>

<pallas_src>
import functools

import jax
import jax.numpy as jnp
from jax import lax
from jax.experimental import pallas as pl
from jax.experimental.pallas import tpu as pltpu
import numpy as np

LANE = 128
NEG_INF = -1e30        # mask value for non-edges
M_FLOOR = -1e4         # finite floor for the running max: masked exp underflows to 0
NEGATIVE_SLOPE = 0.2
VMEM_LIMIT = 32 * 1024 * 1024


def _round_up(x, m):
    return (x + m - 1) // m * m


# ----------------------------------------------------------------------------
# Kernel 1: projection  h = x @ W  + per-node attention terms (all hoisted)
# ----------------------------------------------------------------------------
def project_kernel(x_ref, w_ref, attl_ref, attr_ref, h_ref, alt_ref, ar_ref,
                   *, heads, cp, mxu_dtype):
    x = x_ref[...].astype(mxu_dtype)                  # (TN, Fin_pad)
    w = w_ref[...].astype(mxu_dtype)                  # (Fin_pad, H*Cp)
    h = jnp.dot(x, w, preferred_element_type=jnp.float32)        # (TN, H*Cp) f32

    # att_l / att_r are block-expanded to (H, H*Cp): contracting the packed
    # feature axis yields exactly the per-head dot products (no reshapes).
    # Both outputs are lane-dense (H, TN).
    dn = (((1,), (1,)), ((), ()))
    alt_ref[...] = lax.dot_general(attl_ref[...], h, dn,
                                   preferred_element_type=jnp.float32)   # (H, TN)
    ar_ref[...] = lax.dot_general(attr_ref[...], h, dn,
                                  preferred_element_type=jnp.float32)    # (H, TN)

    # Emit h head-major (H, TN, Cp) so the attention kernel can issue batched
    # (over heads) MXU calls with no in-kernel lane slicing.
    hb = h.astype(h_ref.dtype)
    for hh in range(heads):
        h_ref[hh, :, :] = hb[:, hh * cp:(hh + 1) * cp]


# ----------------------------------------------------------------------------
# Kernel 2: sparse-tile flash-style SuperGAT attention (MX) + epilogue
# ----------------------------------------------------------------------------
def attention_kernel(cnt_ref, ids_ref, hd_ref, hs_ref, ar_ref, alt_ref,
                     mask_ref, bias_ref, out_ref, m_sc, l_sc, acc_sc,
                     *, heads, cp, out_ch, apply_log_softmax):
    i = pl.program_id(0)
    j = pl.program_id(1)
    nj = pl.num_programs(1)

    @pl.when(j == 0)
    def _init():
        m_sc[...] = jnp.full_like(m_sc, M_FLOOR)
        l_sc[...] = jnp.zeros_like(l_sc)
        acc_sc[...] = jnp.zeros_like(acc_sc)

    # Only the first cnt_ref[i] src-tile slots of this dst tile contain edges
    # (host-built schedule); padded tail slots are skipped entirely.
    @pl.when(j < cnt_ref[i])
    def _compute():
        hd = hd_ref[...]                              # (H, TD, Cp) bf16/f32 (dst)
        hs = hs_ref[...]                              # (H, TS, Cp) bf16/f32 (src)
        ar = ar_ref[...]                              # (H, TD) f32   x_i . att_r
        alt = alt_ref[...]                            # (H, TS) f32   x_j . att_l
        edge = mask_ref[...] > 0                      # (TD, TS) bool

        # MX attention logits, batched over heads (2 MXU calls per step).
        logits = jnp.einsum('htc,hsc->hts', hd, hs,
                            preferred_element_type=jnp.float32)          # (H,TD,TS)
        coef = ar[:, :, None] + alt[:, None, :]                          # (H,TD,TS)
        a = coef * jax.nn.sigmoid(logits)
        a = jnp.maximum(a, NEGATIVE_SLOPE * a)        # leaky_relu (slope < 1)
        a = jnp.where(edge[None, :, :], a, NEG_INF)   # mask non-edges

        # Online softmax over source nodes. m is kept >= M_FLOOR so masked
        # entries (-1e30) underflow to exactly 0 in exp -- no second select.
        m_old = m_sc[...]                             # (H, TD, 1)
        m_new = jnp.maximum(m_old, jnp.max(a, axis=-1, keepdims=True))
        corr = jnp.exp(m_old - m_new)
        p = jnp.exp(a - m_new)                        # (H, TD, TS), masked -> 0
        l_sc[...] = corr * l_sc[...] + jnp.sum(p, axis=-1, keepdims=True)
        pv = jnp.einsum('hts,hsc->htc', p.astype(hs.dtype), hs,
                        preferred_element_type=jnp.float32)              # (H,TD,Cp)
        acc_sc[...] = corr * acc_sc[...] + pv
        m_sc[...] = m_new

    @pl.when(j == nj - 1)
    def _finalize():
        l = jnp.maximum(l_sc[...], 1e-30)             # guard isolated rows
        inv_l = pl.reciprocal(l, approx=True)         # EUP slot
        out = jnp.sum(acc_sc[...] * inv_l, axis=0) * jnp.float32(1.0 / heads)
        td = out.shape[0]
        c_out_pad = out_ref.shape[-1]
        if c_out_pad > cp:                            # lane-dense (128-wide) output
            out = jnp.concatenate(
                [out, jnp.zeros((td, c_out_pad - cp), jnp.float32)], axis=-1)
        out = out + bias_ref[...]
        out = jnp.maximum(out, 0.0)                   # F.relu (every layer)
        if apply_log_softmax:                         # fused into the last layer
            col = lax.broadcasted_iota(jnp.int32, out.shape, 1)
            valid = col < out_ch
            xm = jnp.where(valid, out, NEG_INF)
            mrow = jnp.max(xm, axis=-1, keepdims=True)
            e = jnp.where(valid, jnp.exp(xm - mrow), 0.0)
            lse = jnp.log(jnp.sum(e, axis=-1, keepdims=True))
            out = jnp.where(valid, out - mrow - lse, 0.0)
        out_ref[...] = out.astype(out_ref.dtype)


# ----------------------------------------------------------------------------
# Wrappers
# ----------------------------------------------------------------------------
def supergat_layer(x_pad, mask_i8, counts, ids_flat, max_count, layer_p, *,
                   heads, cp, tile, use_bf16, last_layer):
    w_pad, attl_exp, attr_exp, bias_pad, out_ch = layer_p
    n_pad, f_in = x_pad.shape
    hc = heads * cp
    c_out_pad = bias_pad.shape[-1]
    mxu_dtype = jnp.bfloat16 if use_bf16 else jnp.float32
    n_tiles = n_pad // tile

    # ---- kernel 1: projection + per-node attention terms ----
    h, alt, ar = pl.pallas_call(
        functools.partial(project_kernel, heads=heads, cp=cp,
                          mxu_dtype=mxu_dtype),
        grid=(n_tiles,),
        in_specs=[
            pl.BlockSpec((tile, f_in), lambda i: (i, 0)),
            pl.BlockSpec((f_in, hc), lambda i: (0, 0)),
            pl.BlockSpec((heads, hc), lambda i: (0, 0)),
            pl.BlockSpec((heads, hc), lambda i: (0, 0)),
        ],
        out_specs=[
            pl.BlockSpec((heads, tile, cp), lambda i: (0, i, 0)),
            pl.BlockSpec((heads, tile), lambda i: (0, i)),
            pl.BlockSpec((heads, tile), lambda i: (0, i)),
        ],
        out_shape=[
            jax.ShapeDtypeStruct((heads, n_pad, cp), mxu_dtype),
            jax.ShapeDtypeStruct((heads, n_pad), jnp.float32),
            jax.ShapeDtypeStruct((heads, n_pad), jnp.float32),
        ],
        compiler_params=pltpu.CompilerParams(
            dimension_semantics=("parallel",),
            vmem_limit_bytes=VMEM_LIMIT),
    )(x_pad, w_pad, attl_exp, attr_exp)

    # ---- kernel 2: sparse-tile flash attention over (dst_tiles, src slots) ----
    out_dtype = jnp.float32 if last_layer else mxu_dtype
    total_steps = int(np.sum(np.asarray(counts)))
    cost = pl.CostEstimate(
        flops=int(total_steps * (4 * heads * tile * tile * cp
                                 + 12 * heads * tile * tile)),
        transcendentals=int(total_steps * 2 * heads * tile * tile),
        bytes_accessed=int(total_steps * (2 * 2 * heads * tile * cp + tile * tile)
                           + n_pad * c_out_pad * 4),
    )

    def _src_blk(i, j, ids):
        return ids[i * max_count + j]

    grid_spec = pltpu.PrefetchScalarGridSpec(
        num_scalar_prefetch=2,
        grid=(n_tiles, max_count),
        in_specs=[
            pl.BlockSpec((heads, tile, cp),
                         lambda i, j, cnt, ids: (0, i, 0)),                 # h (dst)
            pl.BlockSpec((heads, tile, cp),
                         lambda i, j, cnt, ids: (0, _src_blk(i, j, ids), 0)),  # h (src)
            pl.BlockSpec((heads, tile),
                         lambda i, j, cnt, ids: (0, i)),                    # ar (dst)
            pl.BlockSpec((heads, tile),
                         lambda i, j, cnt, ids: (0, _src_blk(i, j, ids))),  # alt (src)
            pl.BlockSpec((tile, tile),
                         lambda i, j, cnt, ids: (i, _src_blk(i, j, ids))),  # adjacency
            pl.BlockSpec((1, c_out_pad),
                         lambda i, j, cnt, ids: (0, 0)),                    # bias
        ],
        out_specs=pl.BlockSpec((tile, c_out_pad),
                               lambda i, j, cnt, ids: (i, 0)),
        scratch_shapes=[
            pltpu.VMEM((heads, tile, 1), jnp.float32),    # running max m
            pltpu.VMEM((heads, tile, 1), jnp.float32),    # running denom l
            pltpu.VMEM((heads, tile, cp), jnp.float32),   # per-head accumulators
        ],
    )
    out = pl.pallas_call(
        functools.partial(attention_kernel, heads=heads, cp=cp, out_ch=out_ch,
                          apply_log_softmax=last_layer),
        grid_spec=grid_spec,
        out_shape=jax.ShapeDtypeStruct((n_pad, c_out_pad), out_dtype),
        compiler_params=pltpu.CompilerParams(
            dimension_semantics=("parallel", "arbitrary"),
            vmem_limit_bytes=VMEM_LIMIT),
        cost_estimate=cost,
    )(counts, ids_flat, h, h, ar, alt, mask_i8, bias_pad)
    return out


def supergat_forward(x, edge_index, params, *, heads, cp=32, tile=128,
                     use_bf16=True):
    """Full SuperGAT forward (graph_classification=False, eval mode)."""
    n, in_ch = x.shape
    n_pad = _round_up(max(n, tile), tile)
    # First layer K-dim kept 128-padded: tiny one-time cost, safe layout.
    fin_pad = _round_up(in_ch, LANE)

    x_pad = jnp.zeros((n_pad, fin_pad), jnp.float32).at[:n, :in_ch].set(x)
    mask_np = build_adjacency_mask_np(edge_index, n, n_pad)
    counts_np, ids_np, max_count = build_tile_schedule(mask_np, tile, tile)
    mask_i8 = jnp.asarray(mask_np)
    counts = jnp.asarray(counts_np)
    ids_flat = jnp.asarray(ids_np)
    padded_params = pad_params(params, heads, cp, fin_pad)

    act = x_pad
    num_layers = len(padded_params)
    for li, layer_p in enumerate(padded_params):
        act = supergat_layer(act, mask_i8, counts, ids_flat, max_count, layer_p,
                             heads=heads, cp=cp, tile=tile, use_bf16=use_bf16,
                             last_layer=(li == num_layers - 1))
        # dropout: identity in eval mode
    out_ch_last = padded_params[-1][4]
    return act[:n, :out_ch_last]


# ----------------------------------------------------------------------------
# Parameter construction / padding, adjacency mask, tile schedule
# ----------------------------------------------------------------------------
def make_params(key, dims, heads):
    """dims: list of (in_ch, out_ch) per layer. Glorot-ish normal init."""
    params = []
    for (fin, fout) in dims:
        key, k1, k2, k3 = jax.random.split(key, 4)
        scale_w = (2.0 / (fin + heads * fout)) ** 0.5
        w = scale_w * jax.random.normal(k1, (fin, heads * fout), jnp.float32)
        scale_a = (2.0 / (1 + fout)) ** 0.5
        att_l = scale_a * jax.random.normal(k2, (heads, fout), jnp.float32)
        att_r = scale_a * jax.random.normal(k3, (heads, fout), jnp.float32)
        bias = jnp.zeros((1, fout), jnp.float32)
        params.append((w, att_l, att_r, bias))
    return params


def pad_params(params, heads, cp, fin_pad_first):
    """Pad per-head channels to cp and feature dims to lane-dense widths."""
    padded = []
    fin_pad = fin_pad_first
    hc = heads * cp
    for (w, att_l, att_r, bias) in params:
        w_h, attl_h, attr_h, b_h = (np.asarray(w), np.asarray(att_l),
                                    np.asarray(att_r), np.asarray(bias))
        fin = w_h.shape[0]
        out_ch = attl_h.shape[1]
        assert out_ch <= cp, "per-head channels must fit the padded width"
        w_np = np.zeros((fin_pad, hc), np.float32)
        attl_np = np.zeros((heads, hc), np.float32)
        attr_np = np.zeros((heads, hc), np.float32)
        bias_np = np.zeros((1, hc), np.float32)       # lane-dense layer output
        for hh in range(heads):
            w_np[:fin, hh * cp:hh * cp + out_ch] = w_h[:, hh * out_ch:(hh + 1) * out_ch]
            attl_np[hh, hh * cp:hh * cp + out_ch] = attl_h[hh]
            attr_np[hh, hh * cp:hh * cp + out_ch] = attr_h[hh]
        bias_np[0, :out_ch] = b_h[0]
        padded.append((jnp.asarray(w_np), jnp.asarray(attl_np),
                       jnp.asarray(attr_np), jnp.asarray(bias_np), out_ch))
        fin_pad = hc  # next layer consumes the (n_pad, hc) lane-dense activation
    return padded


def build_adjacency_mask_np(edge_index, num_nodes, n_pad):
    """Dense int8 mask A[dst, src] with self loops (PyG SuperGATConv behavior)."""
    mask = np.zeros((n_pad, n_pad), dtype=np.int8)
    src, dst = edge_index
    for s, d in zip(src, dst):
        if s != d:                      # remove_self_loops
            mask[d, s] = 1
    for i in range(n_pad):              # add_self_loops (padded rows too)
        mask[i, i] = 1
    return mask


def build_tile_schedule(mask_np, tile_d, tile_s):
    """Per dst tile: the src tiles containing >=1 edge (tile-level sparsity skip)."""
    n_pad = mask_np.shape[0]
    nd, ns = n_pad // tile_d, n_pad // tile_s
    blocks = mask_np.reshape(nd, tile_d, ns, tile_s).any(axis=(1, 3))   # (nd, ns)
    counts = blocks.sum(axis=1).astype(np.int32)
    max_count = int(counts.max())
    ids = np.zeros((nd, max_count), np.int32)
    for di in range(nd):
        nz = np.nonzero(blocks[di])[0]
        ids[di, :len(nz)] = nz
        # Pad the tail with the last valid block index: a repeated block index
        # means the (gated-off) padded slots trigger no extra DMA.
        ids[di, len(nz):] = nz[-1] if len(nz) else 0
    return counts, ids.reshape(-1), max_count


# ----------------------------------------------------------------------------
# Dense pure-JAX reference (loose numerical cross-check)
# ----------------------------------------------------------------------------
def supergat_reference(x, mask01, params, *, heads):
    n = x.shape[0]
    act = x
    for (w, att_l, att_r, bias) in params:
        out_ch = att_l.shape[1]
        h = act @ w
        hh = h.reshape(n, heads, out_ch)
        logits = jnp.einsum('ihc,jhc->hij', hh, hh)
        al = jnp.einsum('jhc,hc->hj', hh, att_l)
        ar = jnp.einsum('ihc,hc->hi', hh, att_r)
        alpha = (ar[:, :, None] + al[:, None, :]) * jax.nn.sigmoid(logits)
        alpha = jnp.where(alpha > 0, alpha, NEGATIVE_SLOPE * alpha)
        alpha = jnp.where(mask01[None, :, :] > 0, alpha, NEG_INF)
        p = jax.nn.softmax(alpha, axis=-1)
        out = jnp.einsum('hij,jhc->ihc', p, hh).mean(axis=1) + bias
        act = jax.nn.relu(out)
    return jax.nn.log_softmax(act, axis=-1)


# ----------------------------------------------------------------------------
# Driver
# ----------------------------------------------------------------------------
if __name__ == "__main__":
    # Config consistent with the module knobs:
    #   in_channels=8, out_channels=4, number_layers=3, hidden_units=32,
    #   heads_attention=4, dropout=0.5 (eval -> identity),
    #   graph_classification=False.
    N = 300
    IN_CH, HIDDEN, OUT_CH, HEADS, NUM_LAYERS = 8, 32, 4, 4, 3

    key = jax.random.PRNGKey(0)
    key, kx = jax.random.split(key)
    x = jax.random.normal(kx, (N, IN_CH), jnp.float32)

    # Deterministic synthetic graph: bidirectional ring over all nodes plus a
    # few chords confined to the first 100 nodes, so at least one dst tile has
    # fewer nonzero src tiles than the max (exercises the tile-skip path).
    src = (list(range(N)) + [(i + 1) % N for i in range(N)]
           + [i for i in range(0, 100, 7)])
    dst = ([(i + 1) % N for i in range(N)] + list(range(N))
           + [(3 * i + 11) % 100 for i in range(0, 100, 7)])
    edge_index = (np.array(src), np.array(dst))

    dims = ([(IN_CH, HIDDEN)] + [(HIDDEN, HIDDEN)] * (NUM_LAYERS - 2)
            + [(HIDDEN, OUT_CH)])
    params = make_params(key, dims, HEADS)

    out = supergat_forward(x, edge_index, params, heads=HEADS)
    out = jax.block_until_ready(out)
    out_np = np.asarray(out)

    assert out_np.shape == (N, OUT_CH)
    assert np.all(np.isfinite(out_np))
    # log_softmax rows should sum to ~1 in prob space
    assert np.allclose(np.exp(out_np).sum(-1), 1.0, atol=1e-4)

    # Loose cross-check vs dense pure-JAX reference (kernel uses bf16 MXU inputs).
    mask01 = np.zeros((N, N), np.float32)
    for s, d in zip(edge_index[0], edge_index[1]):
        if s != d:
            mask01[d, s] = 1.0
    np.fill_diagonal(mask01, 1.0)
    ref = np.asarray(supergat_reference(x, jnp.asarray(mask01), params, heads=HEADS))
    assert np.max(np.abs(out_np - ref)) < 0.15

    print("KERNEL_OK")
</pallas_src>

<mosaic_0001>
module attributes {stable_mosaic.version = 11 : i64} {
  func.func @project_kernel(%arg0: i32, %arg1: memref<128x128xf32, #tpu.memory_space<vmem>>, %arg2: memref<128x128xf32, #tpu.memory_space<vmem>>, %arg3: memref<4x128xf32, #tpu.memory_space<vmem>>, %arg4: memref<4x128xf32, #tpu.memory_space<vmem>>, %arg5: memref<4x128x32xbf16, #tpu.memory_space<vmem>>, %arg6: memref<4x128xf32, #tpu.memory_space<vmem>>, %arg7: memref<4x128xf32, #tpu.memory_space<vmem>>) attributes {dimension_semantics = [#tpu.dimension_semantics<parallel>], iteration_bounds = array<i64: 3>, scalar_prefetch = 0 : i64, scratch_operands = 0 : i64, tpu.core_type = #tpu.core_type<tc>, window_params = [{transform_indices = @transform_0, window_bounds = array<i64: 128, 128>}, {pipeline_mode = #tpu.pipeline_mode<synchronous>, transform_indices = @transform_1, window_bounds = array<i64: 128, 128>}, {pipeline_mode = #tpu.pipeline_mode<synchronous>, transform_indices = @transform_2, window_bounds = array<i64: 4, 128>}, {pipeline_mode = #tpu.pipeline_mode<synchronous>, transform_indices = @transform_3, window_bounds = array<i64: 4, 128>}, {transform_indices = @transform_4, window_bounds = array<i64: 4, 128, 32>}, {transform_indices = @transform_5, window_bounds = array<i64: 4, 128>}, {transform_indices = @transform_6, window_bounds = array<i64: 4, 128>}]} {
    %c0 = arith.constant 0 : index
    %c0_0 = arith.constant 0 : index
    %0 = vector.load %arg1[%c0, %c0_0] : memref<128x128xf32, #tpu.memory_space<vmem>>, vector<128x128xf32>
    %1 = arith.truncf %0 : vector<128x128xf32> to vector<128x128xbf16>
    %c0_1 = arith.constant 0 : index
    %c0_2 = arith.constant 0 : index
    %2 = vector.load %arg2[%c0_1, %c0_2] : memref<128x128xf32, #tpu.memory_space<vmem>>, vector<128x128xf32>
    %3 = arith.truncf %2 : vector<128x128xf32> to vector<128x128xbf16>
    %cst = arith.constant dense<0.000000e+00> : vector<128x128xf32>
    %4 = tpu.matmul %1, %3, %cst {dimension_numbers = #tpu.dot_dimension_numbers<[1], [0], [0], [1], [0, 0, 1, 1], [], []>} : vector<128x128xbf16>, vector<128x128xbf16>, vector<128x128xf32> -> vector<128x128xf32>
    %c0_3 = arith.constant 0 : index
    %c0_4 = arith.constant 0 : index
    %5 = vector.load %arg3[%c0_3, %c0_4] : memref<4x128xf32, #tpu.memory_space<vmem>>, vector<4x128xf32>
    %cst_5 = arith.constant dense<0.000000e+00> : vector<4x128xf32>
    %6 = tpu.matmul %5, %4, %cst_5 {dimension_numbers = #tpu.dot_dimension_numbers<[1], [1], [0], [0], [0, 0, 1, 0], [], []>} : vector<4x128xf32>, vector<128x128xf32>, vector<4x128xf32> -> vector<4x128xf32>
    %c0_6 = arith.constant 0 : index
    %c0_7 = arith.constant 0 : index
    %7 = vector.load %arg6[%c0_6, %c0_7] : memref<4x128xf32, #tpu.memory_space<vmem>>, vector<4x128xf32>
    tpu.vector_store %arg6[%c0_6, %c0_7], %6 {strides = array<i32>} : memref<4x128xf32, #tpu.memory_space<vmem>>, vector<4x128xf32>,
    %c0_8 = arith.constant 0 : index
    %c0_9 = arith.constant 0 : index
    %8 = vector.load %arg4[%c0_8, %c0_9] : memref<4x128xf32, #tpu.memory_space<vmem>>, vector<4x128xf32>
    %cst_10 = arith.constant dense<0.000000e+00> : vector<4x128xf32>
    %9 = tpu.matmul %8, %4, %cst_10 {dimension_numbers = #tpu.dot_dimension_numbers<[1], [1], [0], [0], [0, 0, 1, 0], [], []>} : vector<4x128xf32>, vector<128x128xf32>, vector<4x128xf32> -> vector<4x128xf32>
    %c0_11 = arith.constant 0 : index
    %c0_12 = arith.constant 0 : index
    %10 = vector.load %arg7[%c0_11, %c0_12] : memref<4x128xf32, #tpu.memory_space<vmem>>, vector<4x128xf32>
    tpu.vector_store %arg7[%c0_11, %c0_12], %9 {strides = array<i32>} : memref<4x128xf32, #tpu.memory_space<vmem>>, vector<4x128xf32>,
    %11 = arith.truncf %4 : vector<128x128xf32> to vector<128x128xbf16>
    %12 = vector.extract_strided_slice %11 {offsets = [0, 0], sizes = [128, 32], strides = [1, 1]} : vector<128x128xbf16> to vector<128x32xbf16>
    %c0_13 = arith.constant 0 : index
    %c0_14 = arith.constant 0 : index
    %c0_15 = arith.constant 0 : index
    %13 = vector.load %arg5[%c0_13, %c0_14, %c0_15] : memref<4x128x32xbf16, #tpu.memory_space<vmem>>, vector<1x128x32xbf16>
    %14 = vector.shape_cast %13 : vector<1x128x32xbf16> to vector<128x32xbf16>
    %15 = vector.shape_cast %12 : vector<128x32xbf16> to vector<1x128x32xbf16>
    tpu.vector_store %arg5[%c0_13, %c0_14, %c0_15], %15 {strides = array<i32>} : memref<4x128x32xbf16, #tpu.memory_space<vmem>>, vector<1x128x32xbf16>,
    %16 = vector.extract_strided_slice %11 {offsets = [0, 32], sizes = [128, 32], strides = [1, 1]} : vector<128x128xbf16> to vector<128x32xbf16>
    %c1 = arith.constant 1 : index
    %c0_16 = arith.constant 0 : index
    %c0_17 = arith.constant 0 : index
    %17 = vector.load %arg5[%c1, %c0_16, %c0_17] : memref<4x128x32xbf16, #tpu.memory_space<vmem>>, vector<1x128x32xbf16>
    %18 = vector.shape_cast %17 : vector<1x128x32xbf16> to vector<128x32xbf16>
    %19 = vector.shape_cast %16 : vector<128x32xbf16> to vector<1x128x32xbf16>
    tpu.vector_store %arg5[%c1, %c0_16, %c0_17], %19 {strides = array<i32>} : memref<4x128x32xbf16, #tpu.memory_space<vmem>>, vector<1x128x32xbf16>,
    %20 = vector.extract_strided_slice %11 {offsets = [0, 64], sizes = [128, 32], strides = [1, 1]} : vector<128x128xbf16> to vector<128x32xbf16>
    %c2 = arith.constant 2 : index
    %c0_18 = arith.constant 0 : index
    %c0_19 = arith.constant 0 : index
    %21 = vector.load %arg5[%c2, %c0_18, %c0_19] : memref<4x128x32xbf16, #tpu.memory_space<vmem>>, vector<1x128x32xbf16>
    %22 = vector.shape_cast %21 : vector<1x128x32xbf16> to vector<128x32xbf16>
    %23 = vector.shape_cast %20 : vector<128x32xbf16> to vector<1x128x32xbf16>
    tpu.vector_store %arg5[%c2, %c0_18, %c0_19], %23 {strides = array<i32>} : memref<4x128x32xbf16, #tpu.memory_space<vmem>>, vector<1x128x32xbf16>,
    %24 = vector.extract_strided_slice %11 {offsets = [0, 96], sizes = [128, 32], strides = [1, 1]} : vector<128x128xbf16> to vector<128x32xbf16>
    %c3 = arith.constant 3 : index
    %c0_20 = arith.constant 0 : index
    %c0_21 = arith.constant 0 : index
    %25 = vector.load %arg5[%c3, %c0_20, %c0_21] : memref<4x128x32xbf16, #tpu.memory_space<vmem>>, vector<1x128x32xbf16>
    %26 = vector.shape_cast %25 : vector<1x128x32xbf16> to vector<128x32xbf16>
    %27 = vector.shape_cast %24 : vector<128x32xbf16> to vector<1x128x32xbf16>
    tpu.vector_store %arg5[%c3, %c0_20, %c0_21], %27 {strides = array<i32>} : memref<4x128x32xbf16, #tpu.memory_space<vmem>>, vector<1x128x32xbf16>,
    return
  }
  func.func @transform_0(%arg0: i32) -> (i32, i32) {
    %c0_i32 = arith.constant 0 : i32
    %c0_i32_0 = arith.constant 0 : i32
    return %arg0, %c0_i32 : i32, i32
  }
  func.func @transform_1(%arg0: i32) -> (i32, i32) {
    %c0_i32 = arith.constant 0 : i32
    %c0_i32_0 = arith.constant 0 : i32
    %c0_i32_1 = arith.constant 0 : i32
    return %c0_i32, %c0_i32_0 : i32, i32
  }
  func.func @transform_2(%arg0: i32) -> (i32, i32) {
    %c0_i32 = arith.constant 0 : i32
    %c0_i32_0 = arith.constant 0 : i32
    %c0_i32_1 = arith.constant 0 : i32
    return %c0_i32, %c0_i32_0 : i32, i32
  }
  func.func @transform_3(%arg0: i32) -> (i32, i32) {
    %c0_i32 = arith.constant 0 : i32
    %c0_i32_0 = arith.constant 0 : i32
    %c0_i32_1 = arith.constant 0 : i32
    return %c0_i32, %c0_i32_0 : i32, i32
  }
  func.func @transform_4(%arg0: i32) -> (i32, i32, i32) {
    %c0_i32 = arith.constant 0 : i32
    %c0_i32_0 = arith.constant 0 : i32
    %c0_i32_1 = arith.constant 0 : i32
    return %c0_i32, %arg0, %c0_i32_0 : i32, i32, i32
  }
  func.func @transform_5(%arg0: i32) -> (i32, i32) {
    %c0_i32 = arith.constant 0 : i32
    %c0_i32_0 = arith.constant 0 : i32
    return %c0_i32, %arg0 : i32, i32
  }
  func.func @transform_6(%arg0: i32) -> (i32, i32) {
    %c0_i32 = arith.constant 0 : i32
    %c0_i32_0 = arith.constant 0 : i32
    return %c0_i32, %arg0 : i32, i32
  }
}

</mosaic_0001>

<bundles_post_ra>
// kernel: tpu_custom_call.1
= control target key start
LH: loop header
LB: loop body
LE: loop exit
PB: predicated region body
PF: predicated region fallthrough
CT: control target
= control target key end

     0   :  { %12 = vsyncpa [#allocation3], 0  ;;  %s2488_s0 = inlined_call_operand.hbm [shape: f32[384,128], index: 0, kind: input, shape index: {}]   ;;  %s2489_s1 = inlined_call_operand.hbm [shape: f32[128,128], index: 1, kind: input, shape index: {}]   ;;  %s2490_s2 = inlined_call_operand.vmem [shape: f32[4,128], index: 2, kind: input, shape index: {}]   ;;  %s2491_s3 = inlined_call_operand.vmem [shape: f32[4,128], index: 3, kind: input, shape index: {}]   ;;  %s2492_s4 = inlined_call_operand.vmem [shape: bf16[4,384,32], index: 4, kind: output, shape index: {0}]   ;;  %s2493_s5 = inlined_call_operand.hbm [shape: f32[4,384], index: 5, kind: output, shape index: {1}]   ;;  %s2494_s6 = inlined_call_operand.hbm [shape: f32[4,384], index: 6, kind: output, shape index: {2}]  }
   0x1   :  { %14 = vsyncpa [#allocation3 + $0x1], 0 }
   0x2   :  { %15 = vsyncpa [#allocation6], 0 }
   0x3   :  { %16 = vsyncpa [#allocation4], 0 }
   0x4   :  { %18 = vsyncpa [#allocation4 + $0x1], 0 }
   0x5   :  { %19 = vsyncpa [#allocation10], 0 }
   0x6   :  { %21 = vsyncpa [#allocation10 + $0x1], 0  ;;  %s1926_s21 = smov 0   ;;  %s1928_s22 = smov 0  }
   0x7   :  { %s1930_s23 = smov 0   ;;  %s1932_s24 = smov 0  }
   0x8 LB: > { %s1947_s25 = sadd.s32 4294967295, %s1877_s24   ;;  %s1343_s26 = sadd.s32 4294967294, %s1877_s24   ;;  %s1877_s24 = sphi %s1932_s24, %s2516_s24   ;;  %s1873_s23 = sphi %s1930_s23, %s2515_s23   ;;  %s1869_s22 = sphi %s1928_s22, %s2514_s22   ;;  %s1865_s21 = sphi %s1926_s21, %s2513_s21  }
   0x9   : > { %p47_p0 = scmp.ne.s32.totalorder %s1869_s22, %s1865_s21  ;;  %p2495_p1 = scmp.eq.s32.totalorder %s1947_s25, 0 }
   0xa   : > { %p166_p3 = scmp.eq.s32.totalorder %s1343_s26, 2  ;;  %p1344_p5 = scmp.ge.s32.totalorder %s1877_s24, 1 }
   0xb   : > { %p1956_p4 = por %p2495_p1, %p47_p0  ;;  %p199_p7 = scmp.lt.s32.totalorder %s1877_s24, 4 }
   0xc   : > { %p1961_p6 = por %p166_p3, %p47_p0  ;;  %s1879_s30 = smov [#allocation5]  }
   0xd   : > { %s2499_s27 = scalar_select %p1956_p4, 1, 0 }
   0xe   : > { %s2500_s28 = scalar_select %p1961_p6, 1, 0 }
   0xf   : > { %p1966_p8 = pnand %p1344_p5, %p199_p7  ;;  %s211_s7 = sshll.u32 %s1879_s30, 4  ;;  %s212_s7 = int_to_ptr.vmem [resolvable:$true] %s211_s7 }
  0x10   : > { %s1979_s9 = sadd.s32 1, %s1877_s24   ;;  %s34_s10 = sadd.s32 1, %s1873_s23 }
  0x11   : > { %s2501_s29 = scalar_select %p1966_p8, 1, 0 }
  0x12   : > { %p1657_p9 = pneg %p1966_p8  ;;  %s31_s11 = ssub.s32 %s1877_s24, %s1979_s9 }
  0x13   : > { %s1717_s14 = scalar_lea.hbm %s2489_s1, 2048 }
  0x14   : > { %p1974_p10 = pnand %p1657_p9, %p2495_p1  ;;  %p1718_p11 = scmp.ne.s32.totalorder %s2489_s1, %s1717_s14 }
  0x15   : > { %p1724_p3 = scmp.lt.u32.totalorder %s1717_s14, %s2489_s1 }
  0x16   : > { %p1719_p12 = pneg %p1974_p10 }
  0x18   : > { %p1720_p13 = pnand %p1719_p12, %p1718_p11 }
  0x1a   : > { %p1721_p0 = pneg %p1720_p13 }
  0x1c   : > { %p1726_p5 = pnand %p1724_p3, %p1721_p0 }
  0x1e   : > { %1729 = shalt.err (!%p1726_p5)
}
  0x1f   : > { %s1730_s19 = scalar_lea.vmem %s212_s7, 2048  ;;  %p1738_p2 = scmp.lt.s32.totalorder %s212_s7, %s212_s7 }
  0x20   : > { %p1731_p7 = scmp.ne.s32.totalorder %s212_s7, %s1730_s19  ;;  %p1739_p6 = scmp.lt.s32.totalorder %s1730_s19, %s1730_s19 }
  0x22   : > { %p1733_p9 = pnand %p1731_p7, %p1719_p12  ;;  %p1740_p4 = por %p1739_p6, %p1738_p2 }
  0x24   : > { %p1734_p1 = pneg %p1733_p9 }
  0x26   : > { %p1741_p8 = pnand %p1740_p4, %p1734_p1 }
  0x28   : > { %1744 = shalt.err (!%p1741_p8)
}
  0x29   : > { %s1880_s20 = smov 128   ;;  %s1881_s26 = smov 8  }
  0x2a   : > { %1660 = dma.hbm_to_vmem [thread:$0]  (!%p1974_p10), %s2489_s1, 2048, %s212_s7, [#allocation6], %s1880_s20, %s1880_s20, %s1881_s26  }
  0x2b   : > { %p32_p1 = scmp.eq.s32.totalorder %s31_s11, 0  ;;  %p41_p2 = scmp.ne.s32.totalorder %s1873_s23, %s1869_s22 }
  0x2c   : > { %p42_p4 = scmp.eq.s32.totalorder %s1877_s24, 0  ;;  %p1673_p6 = scmp.lt.s32.totalorder %s1877_s24, 3 }
  0x2d   : > { %s2008_s13 = scalar_select %p32_p1, %s1873_s23, %s34_s10  }
  0x2e   : > { %p43_p8 = por %p42_p4, %p41_p2  ;;  %p2503_p11 = scmp.eq.s32.totalorder %s1947_s25, 2 }
  0x2f   : > { %s231_s8 = sand.u32 1, %s1873_s23   ;;  %s1429_s15 = sshll.u32 %s1877_s24, 11 }
  0x30   : > { %p2012_p12 = por %p2503_p11, %p41_p2  ;;  %s1347_s16 = sshll.u32 %s231_s8, 7 }
  0x31   : > { %s2021_s19 = scalar_lea.hbm %s2488_s0, %s1429_s15  ;;  %s235_s7 = scalar_lea.vmem [#allocation2], %s1347_s16 }
  0x32   : > { %s242_s10 = sshll.u32 %s235_s7, 4  ;;  %p2023_p10 = pnand %p1673_p6, %p43_p8  ;;  %s2027_s10 = int_to_ptr.vmem [resolvable:$true] %s242_s10 }
  0x33   : > { %s2029_s30 = scalar_lea.sflag [#allocation3], %s231_s8  ;;  %s1745_s12 = scalar_lea.hbm %s2021_s19, 2048 }
  0x34   : > { %p1746_p13 = scmp.ne.s32.totalorder %s2021_s19, %s1745_s12  ;;  %p1747_p0 = pneg %p2023_p10 }
  0x35   : > { %s1750_s17 = scalar_lea.hbm %s2488_s0, 6144  ;;  %p1751_p7 = scmp.lt.u32.totalorder %s2021_s19, %s2488_s0 }
  0x36   : > { %p1748_p3 = pnand %p1747_p0, %p1746_p13  ;;  %p1752_p9 = scmp.lt.u32.totalorder %s1750_s17, %s1745_s12 }
  0x37   : > { %p1754_p2 = scmp.lt.u32.totalorder %s1745_s12, %s2021_s19 }
  0x38   : > { %p1749_p5 = pneg %p1748_p3  ;;  %p1753_p1 = por %p1752_p9, %p1751_p7 }
  0x3a   : > { %p1755_p4 = por %p1754_p2, %p1753_p1 }
  0x3c   : > { %p1756_p6 = pnand %p1755_p4, %p1749_p5 }
  0x3e   : > { %1759 = shalt.err (!%p1756_p6)
}
  0x3f   : > { %s1760_s8 = scalar_lea.vmem %s2027_s10, 2048  ;;  %s1882_s15 = smov [#allocation2]  }
  0x40   : > { %p1761_p8 = scmp.ne.s32.totalorder %s2027_s10, %s1760_s8  ;;  %s1765_s16 = sshll.u32 %s1882_s15, 4  ;;  %s1766_s16 = int_to_ptr.vmem [resolvable:$false] %s1765_s16 }
  0x41   : > { %s1767_s18 = scalar_lea.vmem %s1766_s16, 4096  ;;  %p1768_p3 = scmp.lt.s32.totalorder %s2027_s10, %s1766_s16 }
  0x42   : > { %p1763_p11 = pnand %p1761_p8, %p1747_p0  ;;  %p1769_p7 = scmp.lt.s32.totalorder %s1767_s18, %s1760_s8 }
  0x44   : > { %p1764_p13 = pneg %p1763_p11  ;;  %p1770_p9 = por %p1769_p7, %p1768_p3 }
  0x46   : > { %p1771_p1 = pnand %p1770_p9, %p1764_p13 }
  0x48   : > { %1774 = shalt.err (!%p1771_p1)
}
  0x49   : > { %1664 = dma.hbm_to_vmem [thread:$0]  (!%p2023_p10), %s2021_s19, 2048, %s2027_s10, %s2029_s30, %s1880_s20, %s1880_s20, %s1881_s26  }
  0x4a   : > { %p2506_p0 = scmp.ne.s32.totalorder %s2501_s29, 0 }
  0x4b   : > { %s2063_s12 = sand.u32 (!%p2506_p0), 1, %s1869_s22   ;;  %p2507_p5 = scmp.ne.s32.totalorder (!%p2506_p0), %s2499_s27, 0 }
  0x4c   : > { %254 = sbr.rel (%p2506_p0) target bundleno = 664 (0x298), region = 36  ;;  %s1351_s17 = sshll.u32 (!%p2506_p0), %s2063_s12, 7 }
  0x4d   : > { %s257_s7 = scalar_lea.sflag (!%p2506_p0), [#allocation3], %s2063_s12  ;;  %s2067_s8 = scalar_lea.vmem (!%p2506_p0), [#allocation2], %s1351_s17 }
  0x53   : > { %1848 = dma.done.wait (%p2507_p5), %s257_s7, 2048  }
  0x54   : > { %1850 = vsyncadd (%p2507_p5), %s257_s7, 4294965248  ;;  %p2508_p10 = scmp.eq.s32.totalorder %s1947_s25, 0 }
  0x56   : > { %1852 = dma.done.wait (%p2508_p10), [#allocation6], 2048   ;;  %p2509_p2 = pmov %p2508_p10 }
  0x57   : > { %v329_v0 = vld [vmem:[#allocation5] sm:$0xff]  ;;  %v330_v1 = vld [vmem:[#allocation5 + $0x8] sm:$0xff]  ;;  %v331_v2 = vld [vmem:[#allocation5 + $0x10] sm:$0xff]  ;;  %v1883_v48 = vmov 0.0|0.0   ;;  %vm1884_vm0 = vmmov 0   ;;  %v1885_v49 = vmov 0.0  }
  0x58   : > { %1854 = vsyncadd (%p2509_p2), [#allocation6], 4294965248  ;;  %v345_v3 = vpack.c.bf16 %v330_v1, %v329_v0  ;;  %v332_v4 = vld [vmem:[#allocation5 + $0x18] sm:$0xff]  ;;  %v333_v6 = vld [vmem:[#allocation5 + $0x20] sm:$0xff]  ;;  %1599 = vmatprep.subr.bf16.mxu1 %v1883_v48  ;;  %1561 = vmatprep.mubr.msk.f32.mxu1 %vm1884_vm0, %v1885_v49  ;;  %s1353_s27 = sshll.u32 %s2063_s12, 8  ;;  %vm658_vm1 = vcmask 257024  }
  0x59   : > { %v346_v5 = vpack.c.bf16 %v332_v4, %v331_v2  ;;  %v334_v7 = vld [vmem:[#allocation5 + $0x28] sm:$0xff]  ;;  %v305_v9 = vld [vmem:[%s2067_s8] sm:$0xff]  ;;  %v335_v11 = vld [vmem:[#allocation5 + $0x30] sm:$0xff]  ;;  %s2096_s29 = scalar_lea.vmem [#allocation7], %s1353_s27  ;;  %s1886_s20 = smov 64  }
  0x5a   : > { %1497 = vmatprep.subr.bf16.mxu0 %v345_v3  ;;  %v347_v8 = vpack.c.bf16 %v334_v7, %v333_v6  ;;  %v306_v10 = vld [vmem:[%s2067_s8 + $0x8] sm:$0xff]  ;;  %v336_v12 = vld [vmem:[#allocation5 + $0x38] sm:$0xff]  ;;  %v337_v15 = vld [vmem:[#allocation5 + $0x40] sm:$0xff]  ;;  %s1887_s26 = smov 96   ;;  %s1888_s19 = smov 32  }
  0x5b   : > { %1498 = vmatpush3.bf16.msra.mxu0 %v345_v3  ;;  %v321_v13 = vpack.c.bf16 %v306_v10, %v305_v9  ;;  %v348_v14 = vpack.c.bf16 %v336_v12, %v335_v11  ;;  %v338_v16 = vld [vmem:[#allocation5 + $0x48] sm:$0xff]  ;;  %v339_v18 = vld [vmem:[#allocation5 + $0x50] sm:$0xff]  ;;  %v340_v19 = vld [vmem:[#allocation5 + $0x58] sm:$0xff]  ;;  %s1354_s16 = sshll.u32 %s2063_s12, 2  ;;  %s875_s7 = scalar_lea.sflag [#allocation4], %s2063_s12 }
  0x5c   : > { %1499 = vmatprep.subr.bf16.mxu0 %v346_v5  ;;  %v349_v17 = vpack.c.bf16 %v338_v16, %v337_v15  ;;  %v350_v20 = vpack.c.bf16 %v340_v19, %v339_v18  ;;  %v341_v21 = vld [vmem:[#allocation5 + $0x60] sm:$0xff]  ;;  %v342_v22 = vld [vmem:[#allocation5 + $0x68] sm:$0xff]  ;;  %v343_v24 = vld [vmem:[#allocation5 + $0x70] sm:$0xff]  ;;  %s2343_s18 = scalar_lea.vmem [#allocation8], %s1354_s16  ;;  %s2346_s17 = scalar_lea.vmem [#allocation9], %s1354_s16 }
  0x5d   : > { %1513 = vmatprep.mubr.bf16.mxu0 %v321_v13  ;;  %v351_v23 = vpack.c.bf16 %v342_v22, %v341_v21  ;;  %v344_v25 = vld [vmem:[#allocation5 + $0x78] sm:$0xff]  ;;  %v307_v27 = vld [vmem:[%s2067_s8 + $0x10] sm:$0xff]  ;;  %v309_v29 = vld [vmem:[%s2067_s8 + $0x20] sm:$0xff]  ;;  %s1446_s27 = sshll.u32 (%p2012_p12), %s1947_s25, 6 }
  0x5e   : > { %v352_v26 = vpack.c.bf16 %v344_v25, %v343_v24  ;;  %v308_v28 = vld [vmem:[%s2067_s8 + $0x18] sm:$0xff]  ;;  %v310_v30 = vld [vmem:[%s2067_s8 + $0x28] sm:$0xff]  ;;  %v311_v33 = vld [vmem:[%s2067_s8 + $0x30] sm:$0xff] }
  0x5f   : > { %1500 = vmatpush3.bf16.msra.mxu0 %v346_v5  ;;  %v322_v31 = vpack.c.bf16 %v308_v28, %v307_v27  ;;  %v323_v32 = vpack.c.bf16 %v310_v30, %v309_v29  ;;  %v312_v34 = vld [vmem:[%s2067_s8 + $0x38] sm:$0xff]  ;;  %v313_v35 = vld [vmem:[%s2067_s8 + $0x40] sm:$0xff]  ;;  %v314_v36 = vld [vmem:[%s2067_s8 + $0x48] sm:$0xff] }
  0x60   : > { %1501 = vmatprep.subr.bf16.mxu0 %v347_v8  ;;  %v324_v37 = vpack.c.bf16 %v312_v34, %v311_v33  ;;  %v325_v38 = vpack.c.bf16 %v314_v36, %v313_v35  ;;  %v315_v39 = vld [vmem:[%s2067_s8 + $0x50] sm:$0xff]  ;;  %v316_v40 = vld [vmem:[%s2067_s8 + $0x58] sm:$0xff]  ;;  %v317_v41 = vld [vmem:[%s2067_s8 + $0x60] sm:$0xff] }
  0x61   : > { %v318_v42 = vld [vmem:[%s2067_s8 + $0x68] sm:$0xff]  ;;  %v326_v43 = vpack.c.bf16 %v316_v40, %v315_v39  ;;  %v319_v45 = vld [vmem:[%s2067_s8 + $0x70] sm:$0xff]  ;;  %v320_v46 = vld [vmem:[%s2067_s8 + $0x78] sm:$0xff] }
  0x62   : > { %v327_v44 = vpack.c.bf16 %v318_v42, %v317_v41  ;;  %v328_v47 = vpack.c.bf16 %v320_v46, %v319_v45  ;;  %v522_v27 = vld [vmem:[%s2491_s3] sm:$0xf] }
  0x63   : > { %1502 = vmatpush3.bf16.msra.mxu0 %v347_v8 }
  0x64   : > { %1503 = vmatprep.subr.bf16.mxu0 %v348_v14 }
  0x67   : > { %1504 = vmatpush3.bf16.msra.mxu0 %v348_v14 }
  0x68   : > { %1505 = vmatprep.subr.bf16.mxu0 %v349_v17 }
  0x6b   : > { %1506 = vmatpush3.bf16.msra.mxu0 %v349_v17 }
  0x6c   : > { %1507 = vmatprep.subr.bf16.mxu0 %v350_v20 }
  0x6f   : > { %1508 = vmatpush3.bf16.msra.mxu0 %v350_v20 }
  0x70   : > { %1509 = vmatprep.subr.bf16.mxu0 %v351_v23 }
  0x73   : > { %1510 = vmatpush3.bf16.msra.mxu0 %v351_v23 }
  0x74   : > { %1511 = vmatprep.subr.bf16.mxu0 %v352_v26 }
  0x77   : > { %1512 = vmatpush3.bf16.msra.mxu0 %v352_v26  ;;  %v450_v26 = vld [vmem:[%s2490_s2] sm:$0xf] }
  0x78   : > { %1623 = vmatprep.subr.bf16.mxu0 %v1883_v48 }
  0x7a   : > { %1514 = vmatmul.mubr.bf16.vlgmr.msra.gmra.mrb[0].mxu0 %v322_v31 }
  0x7b   : > { %1517 = vmatprep.mubr.bf16.mxu0 %v323_v32 }
  0x82   : > { %1518 = vmatmul.mubr.bf16.gmra.mrb[4].mxu0 %v324_v37 }
  0x83   : > { %1521 = vmatprep.mubr.bf16.mxu0 %v325_v38 }
  0x8a   : > { %1522 = vmatmul.mubr.bf16.gmra.mrb[8].mxu0 %v326_v43 }
  0x8b   : > { %1525 = vmatprep.mubr.bf16.mxu0 %v327_v44 }
  0x92   : > { %1526 = vmatmul.mubr.bf16.gmra.mrb[12].mxu0 %v328_v47 }
  0x93   : > { %1596 = vmatprep.mubr.msk.f32.mxu0 %vm1884_vm0, %v1885_v49 }
 0x14d   : > { %v1515_v50 = vpop.f32.mrb[0].mxu0 }
 0x14e   : > { %v1432_v51 = vpack.c.bf16 %v1515_v50, %v1515_v50  ;;  %v387_v52 = vpop.f32.mrb[1].mxu0 }
 0x14f   : > { %v1430_v53 = vpack.c.bf16 %v387_v52, %v387_v52  ;;  %v1516_v54 = vpop.f32.mrb[2].mxu0 }
 0x150   : > { %661 = vst.msk [vmem:[%s2096_s29 + $0x8] sm:$0xf] %vm658_vm1, %v1432_v51  ;;  %v1603_v55 = vpack.c.bf16 %v1516_v54, %v1515_v50  ;;  %v1433_v56 = vpack.c.bf16 %v1516_v54, %v1516_v54  ;;  %744 = vrot.lane.b32.xlu0 %v1432_v51, %s1886_s20  ;;  %679 = vrot.lane.b32.xlu1 %v1432_v51, %s1887_s26  ;;  %v390_v57 = vpop.f32.mrb[3].mxu0 }
 0x151   : > { %659 = vst.msk [vmem:[%s2096_s29] sm:$0xf] %vm658_vm1, %v1430_v53  ;;  %v1431_v58 = vpack.c.bf16 %v390_v57, %v390_v57  ;;  %v1600_v59 = vpack.c.bf16 %v390_v57, %v387_v52 }
 0x152   : > { %662 = vst.msk [vmem:[%s2096_s29 + $0xc] sm:$0xf] %vm658_vm1, %v1433_v56 }
 0x153   : > { %660 = vst.msk [vmem:[%s2096_s29 + $0x4] sm:$0xf] %vm658_vm1, %v1431_v58  ;;  %1601 = vmatpush3.bf16.xpose.msra.mxu1 %v1600_v59  ;;  %1625 = vmatpush3.bf16.xpose.msra.mxu0 %v1600_v59 }
 0x154   : > { %809 = vrot.lane.b32.xlu0 %v1432_v51, %s1888_s19  ;;  %681 = vrot.lane.b32.xlu1 %v1433_v56, %s1887_s26 }
 0x155   : > { %v1519_v60 = vpop.f32.mrb[4].mxu0  ;;  %1602 = vmatprep.subr.bf16.mxu1 %v1883_v48  ;;  %1626 = vmatprep.subr.bf16.mxu0 %v1883_v48 }
 0x156   : > { %v2112_v61 = vpack.c.bf16 %v1519_v60, %v1519_v60  ;;  %v403_v62 = vpop.f32.mrb[5].mxu0 }
 0x157   : > { %v2114_v63 = vpack.c.bf16 %v403_v62, %v403_v62  ;;  %v1520_v0 = vpop.f32.mrb[6].mxu0 }
 0x158   : > { %675 = vrot.lane.b32.xlu0 %v1430_v53, %s1887_s26  ;;  %746 = vrot.lane.b32.xlu1 %v1433_v56, %s1886_s20  ;;  %665 = vst.msk [vmem:[%s2096_s29 + $0x18] sm:$0xf] %vm658_vm1, %v2112_v61  ;;  %v1609_v1 = vpack.c.bf16 %v1520_v0, %v1519_v60  ;;  %v1437_v2 = vpack.c.bf16 %v1520_v0, %v1520_v0  ;;  %v406_v3 = vpop.f32.mrb[7].mxu0 }
 0x159   : > { %663 = vst.msk [vmem:[%s2096_s29 + $0x10] sm:$0xf] %vm658_vm1, %v2114_v63  ;;  %v1606_v4 = vpack.c.bf16 %v406_v3, %v403_v62  ;;  %v2124_v5 = vpack.c.bf16 %v406_v3, %v406_v3 }
 0x15a   : > { %666 = vst.msk [vmem:[%s2096_s29 + $0x1c] sm:$0xf] %vm658_vm1, %v1437_v2 }
 0x15b   : > { %1604 = vmatpush3.bf16.xpose.msra.mxu1 %v1603_v55  ;;  %1628 = vmatpush3.bf16.xpose.msra.mxu0 %v1603_v55  ;;  %664 = vst.msk [vmem:[%s2096_s29 + $0x14] sm:$0xf] %vm658_vm1, %v2124_v5 }
 0x15c   : > { %740 = vrot.lane.b32.xlu0 %v1430_v53, %s1886_s20  ;;  %811 = vrot.lane.b32.xlu1 %v1433_v56, %s1888_s19 }
 0x15d   : > { %1605 = vmatprep.subr.bf16.mxu1 %v1883_v48  ;;  %1629 = vmatprep.subr.bf16.mxu0 %v1883_v48  ;;  %v1523_v6 = vpop.f32.mrb[8].mxu0 }
 0x15e   : > { %v2135_v7 = vpack.c.bf16 %v1523_v6, %v1523_v6  ;;  %v419_v8 = vpop.f32.mrb[9].mxu0 }
 0x15f   : > { %v2137_v9 = vpack.c.bf16 %v419_v8, %v419_v8  ;;  %v1524_v10 = vpop.f32.mrb[10].mxu0 }
 0x160   : > { %805 = vrot.lane.b32.xlu0 %v1430_v53, %s1888_s19  ;;  %742 = vrot.lane.b32.xlu1 %v1431_v58, %s1886_s20  ;;  %669 = vst.msk [vmem:[%s2096_s29 + $0x28] sm:$0xf] %vm658_vm1, %v2135_v7  ;;  %v1615_v11 = vpack.c.bf16 %v1524_v10, %v1523_v6  ;;  %v1441_v12 = vpack.c.bf16 %v1524_v10, %v1524_v10  ;;  %v422_v13 = vpop.f32.mrb[11].mxu0 }
 0x161   : > { %667 = vst.msk [vmem:[%s2096_s29 + $0x20] sm:$0xf] %vm658_vm1, %v2137_v9  ;;  %v1612_v14 = vpack.c.bf16 %v422_v13, %v419_v8  ;;  %v2147_v15 = vpack.c.bf16 %v422_v13, %v422_v13 }
 0x162   : > { %670 = vst.msk [vmem:[%s2096_s29 + $0x2c] sm:$0xf] %vm658_vm1, %v1441_v12 }
 0x163   : > { %1607 = vmatpush3.bf16.xpose.msra.mxu1 %v1606_v4  ;;  %1631 = vmatpush3.bf16.xpose.msra.mxu0 %v1606_v4  ;;  %668 = vst.msk [vmem:[%s2096_s29 + $0x24] sm:$0xf] %vm658_vm1, %v2147_v15 }
 0x164   : > { %807 = vrot.lane.b32.xlu1 %v1431_v58, %s1888_s19  ;;  %677 = vrot.lane.b32.xlu0 %v1431_v58, %s1887_s26 }
 0x165   : > { %1608 = vmatprep.subr.bf16.mxu1 %v1883_v48  ;;  %1632 = vmatprep.subr.bf16.mxu0 %v1883_v48  ;;  %v1527_v16 = vpop.f32.mrb[12].mxu0 }
 0x166   : > { %v2158_v17 = vpack.c.bf16 %v1527_v16, %v1527_v16  ;;  %v435_v18 = vpop.f32.mrb[13].mxu0 }
 0x167   : > { %v2160_v19 = vpack.c.bf16 %v435_v18, %v435_v18  ;;  %v1528_v20 = vpop.f32.mrb[14].mxu0 }
 0x168   : > { %687 = vrot.lane.b32.xlu0 %v2112_v61, %s1887_s26  ;;  %689 = vrot.lane.b32.xlu1 %v1437_v2, %s1887_s26  ;;  %673 = vst.msk [vmem:[%s2096_s29 + $0x38] sm:$0xf] %vm658_vm1, %v2158_v17  ;;  %v1621_v21 = vpack.c.bf16 %v1528_v20, %v1527_v16  ;;  %v1445_v22 = vpack.c.bf16 %v1528_v20, %v1528_v20  ;;  %v438_v23 = vpop.f32.mrb[15].mxu0  ;;  %v905_v16 = vld [vmem:[%s2096_s29] sm:$0xff] (%p2012_p12)  }
 0x169   : > { %671 = vst.msk [vmem:[%s2096_s29 + $0x30] sm:$0xf] %vm658_vm1, %v2160_v19  ;;  %v1618_v24 = vpack.c.bf16 %v438_v23, %v435_v18  ;;  %v1443_v25 = vpack.c.bf16 %v438_v23, %v438_v23  ;;  %v913_v18 = vld [vmem:[%s2096_s29 + $0x10] sm:$0xff] (%p2012_p12)  }
 0x16a   : > { %674 = vst.msk [vmem:[%s2096_s29 + $0x3c] sm:$0xf] %vm658_vm1, %v1445_v22  ;;  %v921_v20 = vld [vmem:[%s2096_s29 + $0x20] sm:$0xff] (%p2012_p12)  }
 0x16b   : > { %1610 = vmatpush3.bf16.xpose.msra.mxu1 %v1609_v1  ;;  %1634 = vmatpush3.bf16.xpose.msra.mxu0 %v1609_v1  ;;  %672 = vst.msk [vmem:[%s2096_s29 + $0x34] sm:$0xf] %vm658_vm1, %v1443_v25 }
 0x16c   : > { %752 = vrot.lane.b32.xlu0 %v2112_v61, %s1886_s20  ;;  %754 = vrot.lane.b32.xlu1 %v1437_v2, %s1886_s20 }
 0x16d   : > { %1611 = vmatprep.subr.bf16.mxu1 %v1883_v48  ;;  %1635 = vmatprep.subr.bf16.mxu0 %v1883_v48 }
 0x170   : > { %817 = vrot.lane.b32.xlu0 %v2112_v61, %s1888_s19  ;;  %819 = vrot.lane.b32.xlu1 %v1437_v2, %s1888_s19 }
 0x171   : > { %v933_v23 = vld [vmem:[%s2096_s29 + $0x38] sm:$0xff] (%p2012_p12)  }
 0x173   : > { %1613 = vmatpush3.bf16.xpose.msra.mxu1 %v1612_v14  ;;  %1637 = vmatpush3.bf16.xpose.msra.mxu0 %v1612_v14 }
 0x174   : > { %683 = vrot.lane.b32.xlu0 %v2114_v63, %s1887_s26  ;;  %685 = vrot.lane.b32.xlu1 %v2124_v5, %s1887_s26 }
 0x175   : > { %1614 = vmatprep.subr.bf16.mxu1 %v1883_v48  ;;  %1638 = vmatprep.subr.bf16.mxu0 %v1883_v48 }
 0x178   : > { %748 = vrot.lane.b32.xlu0 %v2114_v63, %s1886_s20  ;;  %750 = vrot.lane.b32.xlu1 %v2124_v5, %s1886_s20 }
 0x17b   : > { %1616 = vmatpush3.bf16.xpose.msra.mxu1 %v1615_v11  ;;  %1640 = vmatpush3.bf16.xpose.msra.mxu0 %v1615_v11 }
 0x17c   : > { %813 = vrot.lane.b32.xlu0 %v2114_v63, %s1888_s19  ;;  %815 = vrot.lane.b32.xlu1 %v2124_v5, %s1888_s19 }
 0x17d   : > { %1617 = vmatprep.subr.bf16.mxu1 %v1883_v48  ;;  %1641 = vmatprep.subr.bf16.mxu0 %v1883_v48 }
 0x180   : > { %695 = vrot.lane.b32.xlu0 %v2135_v7, %s1887_s26  ;;  %697 = vrot.lane.b32.xlu1 %v1441_v12, %s1887_s26 }
 0x183   : > { %1619 = vmatpush3.bf16.xpose.msra.mxu1 %v1618_v24  ;;  %1643 = vmatpush3.bf16.xpose.msra.mxu0 %v1618_v24 }
 0x184   : > { %760 = vrot.lane.b32.xlu0 %v2135_v7, %s1886_s20  ;;  %762 = vrot.lane.b32.xlu1 %v1441_v12, %s1886_s20 }
 0x185   : > { %1620 = vmatprep.subr.bf16.mxu1 %v1883_v48  ;;  %1644 = vmatprep.subr.bf16.mxu0 %v1883_v48 }
 0x188   : > { %825 = vrot.lane.b32.xlu0 %v2135_v7, %s1888_s19  ;;  %827 = vrot.lane.b32.xlu1 %v1441_v12, %s1888_s19 }
 0x18b   : > { %1622 = vmatpush3.bf16.xpose.msra.mxu1 %v1621_v21  ;;  %1646 = vmatpush3.bf16.xpose.msra.mxu0 %v1621_v21  ;;  %v925_v21 = vld [vmem:[%s2096_s29 + $0x28] sm:$0xff] (%p2012_p12)  }
 0x18c   : > { %691 = vrot.lane.b32.xlu0 %v2137_v9, %s1887_s26  ;;  %693 = vrot.lane.b32.xlu1 %v2147_v15, %s1887_s26 }
 0x190   : > { %756 = vrot.lane.b32.xlu0 %v2137_v9, %s1886_s20  ;;  %758 = vrot.lane.b32.xlu1 %v2147_v15, %s1886_s20 }
 0x192   : > { %1562 = vmatmul.mubr.f32.vlgmr.msra.gmra.mrb[0].mxu1 %v450_v26  ;;  %1597 = vmatmul.mubr.f32.vlgmr.msra.gmra.mrb[16].mxu0 %v522_v27 }
 0x194   : > { %821 = vrot.lane.b32.xlu0 %v2137_v9, %s1888_s19  ;;  %823 = vrot.lane.b32.xlu1 %v2147_v15, %s1888_s19 }
 0x198   : > { %703 = vrot.lane.b32.xlu0 %v2158_v17, %s1887_s26  ;;  %705 = vrot.lane.b32.xlu1 %v1445_v22, %s1887_s26 }
 0x19c   : > { %768 = vrot.lane.b32.xlu0 %v2158_v17, %s1886_s20  ;;  %770 = vrot.lane.b32.xlu1 %v1445_v22, %s1886_s20 }
 0x1a0   : > { %699 = vrot.lane.b32.xlu0 %v2160_v19, %s1887_s26  ;;  %701 = vrot.lane.b32.xlu1 %v1443_v25, %s1887_s26 }
 0x1a4   : > { %764 = vrot.lane.b32.xlu0 %v2160_v19, %s1886_s20  ;;  %766 = vrot.lane.b32.xlu1 %v1443_v25, %s1886_s20 }
 0x1a8   : > { %829 = vrot.lane.b32.xlu0 %v2160_v19, %s1888_s19  ;;  %831 = vrot.lane.b32.xlu1 %v1443_v25, %s1888_s19  ;;  %v917_v19 = vld [vmem:[%s2096_s29 + $0x18] sm:$0xff] (%p2012_p12)  }
 0x1ac   : > { %833 = vrot.lane.b32.xlu0 %v2158_v17, %s1888_s19  ;;  %835 = vrot.lane.b32.xlu1 %v1445_v22, %s1888_s19  ;;  %v909_v17 = vld [vmem:[%s2096_s29 + $0x8] sm:$0xff] (%p2012_p12)   ;;  %s2360_s19 = scalar_lea.vmem (%p2012_p12), %s2492_s4, %s1446_s27  ;;  %v929_v22 = vld [vmem:[%s2096_s29 + $0x30] sm:$0xff] (%p2012_p12)  }
 0x1ad   : > { %906 = vst [vmem:[%s2360_s19] sm:$0xff] (%p2012_p12), %v905_v16   ;;  %910 = vst [vmem:[%s2360_s19 + $0x8] sm:$0xff] (%p2012_p12), %v909_v17  }
 0x1ae   : > { %914 = vst [vmem:[%s2360_s19 + $0x10] sm:$0xff] (%p2012_p12), %v913_v18   ;;  %918 = vst [vmem:[%s2360_s19 + $0x18] sm:$0xff] (%p2012_p12), %v917_v19  }
 0x1af   : > { %922 = vst [vmem:[%s2360_s19 + $0x20] sm:$0xff] (%p2012_p12), %v921_v20   ;;  %926 = vst [vmem:[%s2360_s19 + $0x28] sm:$0xff] (%p2012_p12), %v925_v21  }
 0x1b0   : > { %930 = vst [vmem:[%s2360_s19 + $0x30] sm:$0xff] (%p2012_p12), %v929_v22   ;;  %934 = vst [vmem:[%s2360_s19 + $0x38] sm:$0xff] (%p2012_p12), %v933_v23  }
 0x1c2   : > { %v745_v28 = vpop.permute.xlu0 %744  ;;  %v680_v29 = vpop.permute.xlu1 %679 }
 0x1c3   : > { %1390 = vst.msk [vmem:[%s2096_s29 + $0x88] sm:$0xf] %vm658_vm1, %v745_v28  ;;  %1374 = vst.msk [vmem:[%s2096_s29 + $0x48] sm:$0xf] %vm658_vm1, %v680_v29 }
 0x1c6   : > { %v810_v30 = vpop.permute.xlu0 %809  ;;  %v682_v31 = vpop.permute.xlu1 %681 }
 0x1c7   : > { %1406 = vst.msk [vmem:[%s2096_s29 + $0xc8] sm:$0xf] %vm658_vm1, %v810_v30  ;;  %1375 = vst.msk [vmem:[%s2096_s29 + $0x4c] sm:$0xf] %vm658_vm1, %v682_v31 }
 0x1ca   : > { %v676_v32 = vpop.permute.xlu0 %675  ;;  %v747_v33 = vpop.permute.xlu1 %746 }
 0x1cb   : > { %1372 = vst.msk [vmem:[%s2096_s29 + $0x40] sm:$0xf] %vm658_vm1, %v676_v32  ;;  %1391 = vst.msk [vmem:[%s2096_s29 + $0x8c] sm:$0xf] %vm658_vm1, %v747_v33 }
 0x1ce   : > { %v741_v34 = vpop.permute.xlu0 %740  ;;  %v812_v35 = vpop.permute.xlu1 %811  ;;  %v941_v25 = vld [vmem:[%s2096_s29 + $0x48] sm:$0xff] (%p2012_p12)  }
 0x1cf   : > { %1388 = vst.msk [vmem:[%s2096_s29 + $0x80] sm:$0xf] %vm658_vm1, %v741_v34  ;;  %1407 = vst.msk [vmem:[%s2096_s29 + $0xcc] sm:$0xf] %vm658_vm1, %v812_v35 }
 0x1d0   : > { %942 = vst [vmem:[%s2360_s19 + $0xc8] sm:$0xff] (%p2012_p12), %v941_v25  }
 0x1d2   : > { %v806_v36 = vpop.permute.xlu0 %805  ;;  %v743_v37 = vpop.permute.xlu1 %742  ;;  %v973_v33 = vld [vmem:[%s2096_s29 + $0x88] sm:$0xff] (%p2012_p12)  }
 0x1d3   : > { %1404 = vst.msk [vmem:[%s2096_s29 + $0xc0] sm:$0xf] %vm658_vm1, %v806_v36  ;;  %1389 = vst.msk [vmem:[%s2096_s29 + $0x84] sm:$0xf] %vm658_vm1, %v743_v37 }
 0x1d4   : > { %974 = vst [vmem:[%s2360_s19 + $0x188] sm:$0xff] (%p2012_p12), %v973_v33  }
 0x1d6   : > { %v808_v38 = vpop.permute.xlu1 %807  ;;  %v678_v39 = vpop.permute.xlu0 %677 }
 0x1d7   : > { %1405 = vst.msk [vmem:[%s2096_s29 + $0xc4] sm:$0xf] %vm658_vm1, %v808_v38  ;;  %1373 = vst.msk [vmem:[%s2096_s29 + $0x44] sm:$0xf] %vm658_vm1, %v678_v39 }
 0x1da   : > { %v688_v40 = vpop.permute.xlu0 %687  ;;  %v690_v41 = vpop.permute.xlu1 %689  ;;  %v969_v32 = vld [vmem:[%s2096_s29 + $0x80] sm:$0xff] (%p2012_p12)  }
 0x1db   : > { %1378 = vst.msk [vmem:[%s2096_s29 + $0x58] sm:$0xf] %vm658_vm1, %v688_v40  ;;  %1379 = vst.msk [vmem:[%s2096_s29 + $0x5c] sm:$0xf] %vm658_vm1, %v690_v41  ;;  %v1005_v41 = vld [vmem:[%s2096_s29 + $0xc8] sm:$0xff] (%p2012_p12)  }
 0x1dc   : > { %970 = vst [vmem:[%s2360_s19 + $0x180] sm:$0xff] (%p2012_p12), %v969_v32   ;;  %1006 = vst [vmem:[%s2360_s19 + $0x248] sm:$0xff] (%p2012_p12), %v1005_v41  }
 0x1de   : > { %v753_v42 = vpop.permute.xlu0 %752  ;;  %v755_v43 = vpop.permute.xlu1 %754  ;;  %v937_v24 = vld [vmem:[%s2096_s29 + $0x40] sm:$0xff] (%p2012_p12)  }
 0x1df   : > { %1394 = vst.msk [vmem:[%s2096_s29 + $0x98] sm:$0xf] %vm658_vm1, %v753_v42  ;;  %1395 = vst.msk [vmem:[%s2096_s29 + $0x9c] sm:$0xf] %vm658_vm1, %v755_v43  ;;  %v1001_v40 = vld [vmem:[%s2096_s29 + $0xc0] sm:$0xff] (%p2012_p12)  }
 0x1e0   : > { %938 = vst [vmem:[%s2360_s19 + $0xc0] sm:$0xff] (%p2012_p12), %v937_v24   ;;  %1002 = vst [vmem:[%s2360_s19 + $0x240] sm:$0xff] (%p2012_p12), %v1001_v40  }
 0x1e2   : > { %v818_v44 = vpop.permute.xlu0 %817  ;;  %v820_v45 = vpop.permute.xlu1 %819  ;;  %v949_v27 = vld [vmem:[%s2096_s29 + $0x58] sm:$0xff] (%p2012_p12)  }
 0x1e3   : > { %1410 = vst.msk [vmem:[%s2096_s29 + $0xd8] sm:$0xf] %vm658_vm1, %v818_v44  ;;  %1411 = vst.msk [vmem:[%s2096_s29 + $0xdc] sm:$0xf] %vm658_vm1, %v820_v45 }
 0x1e4   : > { %950 = vst [vmem:[%s2360_s19 + $0xd8] sm:$0xff] (%p2012_p12), %v949_v27  }
 0x1e6   : > { %v684_v46 = vpop.permute.xlu0 %683  ;;  %v686_v47 = vpop.permute.xlu1 %685  ;;  %v981_v35 = vld [vmem:[%s2096_s29 + $0x98] sm:$0xff] (%p2012_p12)  }
 0x1e7   : > { %1376 = vst.msk [vmem:[%s2096_s29 + $0x50] sm:$0xf] %vm658_vm1, %v684_v46  ;;  %1377 = vst.msk [vmem:[%s2096_s29 + $0x54] sm:$0xf] %vm658_vm1, %v686_v47 }
 0x1e8   : > { %982 = vst [vmem:[%s2360_s19 + $0x198] sm:$0xff] (%p2012_p12), %v981_v35  }
 0x1ea   : > { %v749_v48 = vpop.permute.xlu0 %748  ;;  %v751_v49 = vpop.permute.xlu1 %750  ;;  %v1013_v43 = vld [vmem:[%s2096_s29 + $0xd8] sm:$0xff] (%p2012_p12)  }
 0x1eb   : > { %1392 = vst.msk [vmem:[%s2096_s29 + $0x90] sm:$0xf] %vm658_vm1, %v749_v48  ;;  %1393 = vst.msk [vmem:[%s2096_s29 + $0x94] sm:$0xf] %vm658_vm1, %v751_v49 }
 0x1ec   : > { %1014 = vst [vmem:[%s2360_s19 + $0x258] sm:$0xff] (%p2012_p12), %v1013_v43  }
 0x1ee   : > { %v814_v50 = vpop.permute.xlu0 %813  ;;  %v816_v51 = vpop.permute.xlu1 %815  ;;  %v945_v26 = vld [vmem:[%s2096_s29 + $0x50] sm:$0xff] (%p2012_p12)  }
 0x1ef   : > { %1408 = vst.msk [vmem:[%s2096_s29 + $0xd0] sm:$0xf] %vm658_vm1, %v814_v50  ;;  %1409 = vst.msk [vmem:[%s2096_s29 + $0xd4] sm:$0xf] %vm658_vm1, %v816_v51 }
 0x1f0   : > { %946 = vst [vmem:[%s2360_s19 + $0xd0] sm:$0xff] (%p2012_p12), %v945_v26  }
 0x1f2   : > { %v696_v52 = vpop.permute.xlu0 %695  ;;  %v698_v53 = vpop.permute.xlu1 %697  ;;  %v977_v34 = vld [vmem:[%s2096_s29 + $0x90] sm:$0xff] (%p2012_p12)  }
 0x1f3   : > { %1382 = vst.msk [vmem:[%s2096_s29 + $0x68] sm:$0xf] %vm658_vm1, %v696_v52  ;;  %1383 = vst.msk [vmem:[%s2096_s29 + $0x6c] sm:$0xf] %vm658_vm1, %v698_v53 }
 0x1f4   : > { %978 = vst [vmem:[%s2360_s19 + $0x190] sm:$0xff] (%p2012_p12), %v977_v34  }
 0x1f6   : > { %v761_v54 = vpop.permute.xlu0 %760  ;;  %v763_v55 = vpop.permute.xlu1 %762  ;;  %v1009_v42 = vld [vmem:[%s2096_s29 + $0xd0] sm:$0xff] (%p2012_p12)  }
 0x1f7   : > { %1398 = vst.msk [vmem:[%s2096_s29 + $0xa8] sm:$0xf] %vm658_vm1, %v761_v54  ;;  %1399 = vst.msk [vmem:[%s2096_s29 + $0xac] sm:$0xf] %vm658_vm1, %v763_v55 }
 0x1f8   : > { %1010 = vst [vmem:[%s2360_s19 + $0x250] sm:$0xff] (%p2012_p12), %v1009_v42  }
 0x1fa   : > { %v826_v56 = vpop.permute.xlu0 %825  ;;  %v828_v57 = vpop.permute.xlu1 %827  ;;  %v957_v29 = vld [vmem:[%s2096_s29 + $0x68] sm:$0xff] (%p2012_p12)  }
 0x1fb   : > { %1414 = vst.msk [vmem:[%s2096_s29 + $0xe8] sm:$0xf] %vm658_vm1, %v826_v56  ;;  %1415 = vst.msk [vmem:[%s2096_s29 + $0xec] sm:$0xf] %vm658_vm1, %v828_v57 }
 0x1fc   : > { %958 = vst [vmem:[%s2360_s19 + $0xe8] sm:$0xff] (%p2012_p12), %v957_v29  }
 0x1fe   : > { %v692_v58 = vpop.permute.xlu0 %691  ;;  %v694_v59 = vpop.permute.xlu1 %693  ;;  %v989_v37 = vld [vmem:[%s2096_s29 + $0xa8] sm:$0xff] (%p2012_p12)  }
 0x1ff   : > { %1380 = vst.msk [vmem:[%s2096_s29 + $0x60] sm:$0xf] %vm658_vm1, %v692_v58  ;;  %1381 = vst.msk [vmem:[%s2096_s29 + $0x64] sm:$0xf] %vm658_vm1, %v694_v59 }
 0x200   : > { %990 = vst [vmem:[%s2360_s19 + $0x1a8] sm:$0xff] (%p2012_p12), %v989_v37  }
 0x202   : > { %v757_v60 = vpop.permute.xlu0 %756  ;;  %v759_v61 = vpop.permute.xlu1 %758  ;;  %v1021_v45 = vld [vmem:[%s2096_s29 + $0xe8] sm:$0xff] (%p2012_p12)  }
 0x203   : > { %1396 = vst.msk [vmem:[%s2096_s29 + $0xa0] sm:$0xf] %vm658_vm1, %v757_v60  ;;  %1397 = vst.msk [vmem:[%s2096_s29 + $0xa4] sm:$0xf] %vm658_vm1, %v759_v61 }
 0x204   : > { %1022 = vst [vmem:[%s2360_s19 + $0x268] sm:$0xff] (%p2012_p12), %v1021_v45  }
 0x206   : > { %v822_v62 = vpop.permute.xlu0 %821  ;;  %v824_v63 = vpop.permute.xlu1 %823  ;;  %v953_v28 = vld [vmem:[%s2096_s29 + $0x60] sm:$0xff] (%p2012_p12)  }
 0x207   : > { %1412 = vst.msk [vmem:[%s2096_s29 + $0xe0] sm:$0xf] %vm658_vm1, %v822_v62  ;;  %1413 = vst.msk [vmem:[%s2096_s29 + $0xe4] sm:$0xf] %vm658_vm1, %v824_v63 }
 0x208   : > { %954 = vst [vmem:[%s2360_s19 + $0xe0] sm:$0xff] (%p2012_p12), %v953_v28  }
 0x20a   : > { %v704_v0 = vpop.permute.xlu0 %703  ;;  %v706_v1 = vpop.permute.xlu1 %705  ;;  %v985_v36 = vld [vmem:[%s2096_s29 + $0xa0] sm:$0xff] (%p2012_p12)  }
 0x20b   : > { %1386 = vst.msk [vmem:[%s2096_s29 + $0x78] sm:$0xf] %vm658_vm1, %v704_v0  ;;  %1387 = vst.msk [vmem:[%s2096_s29 + $0x7c] sm:$0xf] %vm658_vm1, %v706_v1 }
 0x20c   : > { %986 = vst [vmem:[%s2360_s19 + $0x1a0] sm:$0xff] (%p2012_p12), %v985_v36  }
 0x20e   : > { %v769_v2 = vpop.permute.xlu0 %768  ;;  %v771_v3 = vpop.permute.xlu1 %770  ;;  %v1017_v44 = vld [vmem:[%s2096_s29 + $0xe0] sm:$0xff] (%p2012_p12)  }
 0x20f   : > { %1402 = vst.msk [vmem:[%s2096_s29 + $0xb8] sm:$0xf] %vm658_vm1, %v769_v2  ;;  %1403 = vst.msk [vmem:[%s2096_s29 + $0xbc] sm:$0xf] %vm658_vm1, %v771_v3 }
 0x210   : > { %1018 = vst [vmem:[%s2360_s19 + $0x260] sm:$0xff] (%p2012_p12), %v1017_v44  }
 0x212   : > { %v700_v4 = vpop.permute.xlu0 %699  ;;  %v702_v5 = vpop.permute.xlu1 %701  ;;  %v965_v31 = vld [vmem:[%s2096_s29 + $0x78] sm:$0xff] (%p2012_p12)  }
 0x213   : > { %1384 = vst.msk [vmem:[%s2096_s29 + $0x70] sm:$0xf] %vm658_vm1, %v700_v4  ;;  %1385 = vst.msk [vmem:[%s2096_s29 + $0x74] sm:$0xf] %vm658_vm1, %v702_v5 }
 0x214   : > { %966 = vst [vmem:[%s2360_s19 + $0xf8] sm:$0xff] (%p2012_p12), %v965_v31  }
 0x216   : > { %v765_v6 = vpop.permute.xlu0 %764  ;;  %v767_v7 = vpop.permute.xlu1 %766  ;;  %v997_v39 = vld [vmem:[%s2096_s29 + $0xb8] sm:$0xff] (%p2012_p12)  }
 0x217   : > { %1400 = vst.msk [vmem:[%s2096_s29 + $0xb0] sm:$0xf] %vm658_vm1, %v765_v6  ;;  %1401 = vst.msk [vmem:[%s2096_s29 + $0xb4] sm:$0xf] %vm658_vm1, %v767_v7 }
 0x218   : > { %998 = vst [vmem:[%s2360_s19 + $0x1b8] sm:$0xff] (%p2012_p12), %v997_v39  }
 0x21a   : > { %v830_v8 = vpop.permute.xlu0 %829  ;;  %v832_v9 = vpop.permute.xlu1 %831  ;;  %v961_v30 = vld [vmem:[%s2096_s29 + $0x70] sm:$0xff] (%p2012_p12)  }
 0x21b   : > { %1416 = vst.msk [vmem:[%s2096_s29 + $0xf0] sm:$0xf] %vm658_vm1, %v830_v8  ;;  %1417 = vst.msk [vmem:[%s2096_s29 + $0xf4] sm:$0xf] %vm658_vm1, %v832_v9 }
 0x21c   : > { %962 = vst [vmem:[%s2360_s19 + $0xf0] sm:$0xff] (%p2012_p12), %v961_v30  }
 0x21e   : > { %v834_v10 = vpop.permute.xlu0 %833  ;;  %v836_v11 = vpop.permute.xlu1 %835  ;;  %v993_v38 = vld [vmem:[%s2096_s29 + $0xb0] sm:$0xff] (%p2012_p12)  }
 0x21f   : > { %1418 = vst.msk [vmem:[%s2096_s29 + $0xf8] sm:$0xf] %vm658_vm1, %v834_v10  ;;  %1419 = vst.msk [vmem:[%s2096_s29 + $0xfc] sm:$0xf] %vm658_vm1, %v836_v11 }
 0x220   : > { %994 = vst [vmem:[%s2360_s19 + $0x1b0] sm:$0xff] (%p2012_p12), %v993_v38  }
 0x222   : > { %v1025_v46 = vld [vmem:[%s2096_s29 + $0xf0] sm:$0xff] (%p2012_p12)  }
 0x223   : > { %1026 = vst [vmem:[%s2360_s19 + $0x270] sm:$0xff] (%p2012_p12), %v1025_v46  }
 0x226   : > { %v1029_v47 = vld [vmem:[%s2096_s29 + $0xf8] sm:$0xff] (%p2012_p12)  }
 0x227   : > { %1030 = vst [vmem:[%s2360_s19 + $0x278] sm:$0xff] (%p2012_p12), %v1029_v47  }
 0x260   : > { %886 = sbr.rel (!%p2012_p12) target bundleno = 615 (0x267), region = 48 }
 0x265   : > { %v517_v12 = vpop.f32.mrb[0].mxu1  ;;  %v589_v13 = vpop.f32.mrb[16].mxu0 }
 0x266   : > { %521 = vst [vmem:[%s2343_s18] sm:$0xf] %v517_v12  ;;  %593 = vst [vmem:[%s2346_s17] sm:$0xf] %v589_v13  ;;  %v1563_v14 = vpop.f32.mrb[1].mxu1  ;;  %v1598_v15 = vpop.f32.mrb[17].mxu0 }
 0x267 PF: > { %s2498_s10 = sshll.u32 %s1947_s25, 6  ;;  %s1190_s11 = sshll.u32 %s2343_s18, 4  ;;  %s1191_s11 = int_to_ptr.vmem [resolvable:$true] %s1190_s11 }
 0x268   : > { %s1188_s16 = scalar_lea.hbm %s2493_s5, %s2498_s10  ;;  %s1775_s27 = scalar_lea.vmem %s1191_s11, 64 }
 0x269   : > { %p1776_p4 = scmp.ne.s32.totalorder %s1191_s11, %s1775_s27  ;;  %s1889_s29 = smov [#allocation8]  }
 0x26a   : > { %s1779_s20 = sshll.u32 %s1889_s29, 4  ;;  %s1780_s20 = int_to_ptr.vmem [resolvable:$false] %s1779_s20 }
 0x26b   : > { %p1777_p6 = pnand %p1776_p4, %p2012_p12  ;;  %s1781_s26 = scalar_lea.vmem %s1780_s20, 128 }
 0x26c   : > { %p1782_p11 = scmp.lt.s32.totalorder %s1191_s11, %s1780_s20  ;;  %p1783_p13 = scmp.lt.s32.totalorder %s1781_s26, %s1775_s27 }
 0x26d   : > { %p1778_p8 = pneg %p1777_p6 }
 0x26e   : > { %p1784_p3 = por %p1783_p13, %p1782_p11 }
 0x270   : > { %p1785_p7 = pnand %p1784_p3, %p1778_p8 }
 0x272   : > { %1788 = shalt.err (!%p1785_p7)
}
 0x273   : > { %s1789_s18 = scalar_lea.hbm %s1188_s16, 64  ;;  %s1793_s15 = scalar_lea.hbm %s2493_s5, 192 }
 0x274   : > { %p1790_p9 = scmp.ne.s32.totalorder %s1188_s16, %s1789_s18  ;;  %p1794_p5 = scmp.lt.u32.totalorder %s1188_s16, %s2493_s5 }
 0x275   : > { %p1795_p10 = scmp.lt.u32.totalorder %s1793_s15, %s1789_s18  ;;  %p1797_p4 = scmp.lt.u32.totalorder %s1789_s18, %s1188_s16 }
 0x276   : > { %p1791_p1 = pnand %p1790_p9, %p2012_p12 }
 0x277   : > { %p1796_p2 = por %p1795_p10, %p1794_p5 }
 0x278   : > { %p1792_p0 = pneg %p1791_p1 }
 0x279   : > { %p1798_p6 = por %p1797_p4, %p1796_p2 }
 0x27b   : > { %p1799_p8 = pnand %p1798_p6, %p1792_p0 }
 0x27d   : > { %1802 = shalt.err (!%p1799_p8)
}
 0x27e   : > { %1653 = dma.vmem_to_hbm [thread:$0]  (%p2012_p12), %s1191_s11, 64, %s1188_s16, %s875_s7  }
 0x27f   : > { %s2510_s27 = sshll.u32 %s1947_s25, 6  ;;  %s1203_s10 = sshll.u32 %s2346_s17, 4  ;;  %s1204_s10 = int_to_ptr.vmem [resolvable:$true] %s1203_s10 }
 0x280   : > { %s2449_s8 = scalar_lea.hbm %s2494_s6, %s2510_s27  ;;  %s1803_s26 = scalar_lea.vmem %s1204_s10, 64 }
 0x281   : > { %p1804_p11 = scmp.ne.s32.totalorder %s1204_s10, %s1803_s26  ;;  %s1890_s18 = smov [#allocation9]  }
 0x282   : > { %s1807_s19 = sshll.u32 %s1890_s18, 4  ;;  %s1808_s19 = int_to_ptr.vmem [resolvable:$false] %s1807_s19 }
 0x283   : > { %p1805_p13 = pnand %p1804_p11, %p2012_p12  ;;  %s1809_s30 = scalar_lea.vmem %s1808_s19, 128 }
 0x284   : > { %p1810_p7 = scmp.lt.s32.totalorder %s1204_s10, %s1808_s19  ;;  %p1811_p9 = scmp.lt.s32.totalorder %s1809_s30, %s1803_s26 }
 0x285   : > { %p1806_p3 = pneg %p1805_p13 }
 0x286   : > { %p1812_p1 = por %p1811_p9, %p1810_p7 }
 0x288   : > { %p1813_p0 = pnand %p1812_p1, %p1806_p3 }
 0x28a   : > { %1816 = shalt.err (!%p1813_p0)
}
 0x28b   : > { %s1817_s25 = scalar_lea.hbm %s2449_s8, 64  ;;  %s1821_s11 = scalar_lea.hbm %s2494_s6, 192 }
 0x28c   : > { %p1818_p5 = scmp.ne.s32.totalorder %s2449_s8, %s1817_s25  ;;  %p1822_p4 = scmp.lt.u32.totalorder %s2449_s8, %s2494_s6 }
 0x28d   : > { %p1823_p6 = scmp.lt.u32.totalorder %s1821_s11, %s1817_s25  ;;  %p1825_p11 = scmp.lt.u32.totalorder %s1817_s25, %s2449_s8 }
 0x28e   : > { %p1819_p10 = pnand %p1818_p5, %p2012_p12 }
 0x28f   : > { %p1824_p8 = por %p1823_p6, %p1822_p4 }
 0x290   : > { %p1820_p2 = pneg %p1819_p10 }
 0x291   : > { %p1826_p13 = por %p1825_p11, %p1824_p8 }
 0x293   : > { %p1827_p3 = pnand %p1826_p13, %p1820_p2 }
 0x295   : > { %1830 = shalt.err (!%p1827_p3)
}
 0x296   : > { %s2511_s27 = scalar_lea.sflag [#allocation10], %s2063_s12 }
 0x297   : > { %1654 = dma.vmem_to_hbm [thread:$0]  (%p2012_p12), %s1204_s10, 64, %s2449_s8, %s2511_s27  }
 0x298 PF: > { %p1675_p7 = scmp.ge.s32.totalorder %s1877_s24, 2  ;;  %s1222_s29 = sand.u32 1, %s1865_s21  }
 0x299   : > { %p2512_p9 = scmp.ne.s32.totalorder %s2500_s28, 0  ;;  %s1223_s20 = scalar_lea.sflag [#allocation4], %s1222_s29 }
 0x29b   : > { %p1666_p1 = pnand %p1675_p7, %p2512_p9 }
 0x29d   : > { %1856 = dma.done.wait (!%p1666_p1), %s1223_s20, 64  }
 0x29e   : > { %1858 = vsyncadd (!%p1666_p1), %s1223_s20, 4294967232  ;;  %s1232_s26 = scalar_lea.sflag [#allocation10], %s1222_s29 }
 0x29f   : > { %1860 = dma.done.wait (!%p1666_p1), %s1232_s26, 64  }
 0x2a0   : > { %1862 = vsyncadd (!%p1666_p1), %s1232_s26, 4294967232  ;;  %p24_p12 = scmp.ge.s32.totalorder %s1979_s9, 5   ;;  %s2513_s21 = smov %s1869_s22 }
 0x2a1   : > { %s2514_s22 = smov %s1873_s23  ;;  %s2515_s23 = smov %s2008_s13 }
 0x2a2   : > { %s2516_s24 = smov %s1979_s9  ;;  %26 = sbr.rel (!%p24_p12) target bundleno = 8 (0x8), region = 158 }
 0x2a9   :  { %1237 = vsyncpa [#allocation3], 1 }
 0x2aa   :  { %1239 = vsyncpa [#allocation3 + $0x1], 1 }
 0x2ab   :  { %1240 = vsyncpa [#allocation6], 1 }
 0x2ac   :  { %1241 = vsyncpa [#allocation4], 1 }
 0x2ad   :  { %1243 = vsyncpa [#allocation4 + $0x1], 1 }
 0x2ae   :  { %1244 = vsyncpa [#allocation10], 1 }
 0x2af   :  { %1246 = vsyncpa [#allocation10 + $0x1], 1 }

</bundles_post_ra>
